<compile_context>
chip_gen: v6e
topology: v6e:2x2x1
jax: 0.10.0
libtpu: 0.0.40
codegen_flags: <defaults>
</compile_context>

<pallas_src>
import functools

import jax
import jax.numpy as jnp
from jax import lax
from jax.experimental import pallas as pl
from jax.experimental.pallas import tpu as pltpu

_LANES = 128


def _round_up(x, m):
    return ((x + m - 1) // m) * m


def _sigmoid(x):
    # sigmoid(x) == 0.5 * tanh(0.5 * x) + 0.5  -> exactly one EUP op per vreg.
    return 0.5 * jnp.tanh(0.5 * x) + 0.5


def _gru_packed_kernel(hidden_size, gi_ref, h0_ref, whh_ref, bhn_ref, out_ref):
    """GRU recurrence, small-H path (3*H <= 128).

    Gate blocks [r | z | n] live in contiguous H-lane groups of one 128-lane
    vreg; lane realignment between gate blocks uses pltpu.roll (XLU slot, idle
    in this kernel). Lanes >= H of the carried hidden state hold bounded
    garbage; they multiply all-zero rows of W_hh and are sliced off outside.
    """
    H = hidden_size
    S = gi_ref.shape[0]
    Wg = whh_ref.shape[-1]          # == 128

    bhn = bhn_ref[...]              # (1, Wg); b_hh_n sits in the n block
    h = h0_ref[...]                 # (1, Wg); real state in lanes [0:H]

    # Recurrence fully unrolled: S is a small static constant; every slice is
    # static, so each step is one M=1 MXU matmul + 2 EUP + 3 XLU ops.
    for t in range(S):
        gi = gi_ref[t:t + 1, :]                                     # (1, Wg)
        # Read W_hh from its Ref inside the dot (never hoisted as a value).
        gh = jnp.dot(h.astype(whh_ref.dtype), whh_ref[...],
                     preferred_element_type=jnp.float32)            # (1, Wg)
        rz = _sigmoid(gi + gh)            # r @ lanes [0:H], z @ lanes [H:2H]
        r_at_n = pltpu.roll(rz, shift=2 * H, axis=1)        # r -> n block
        n_all = jnp.tanh(gi + r_at_n * (gh + bhn))          # n @ lanes [2H:3H]
        z_al = pltpu.roll(rz, shift=Wg - H, axis=1)         # z -> lanes [0:H]
        n_al = pltpu.roll(n_all, shift=Wg - 2 * H, axis=1)  # n -> lanes [0:H]
        h = (1.0 - z_al) * n_al + z_al * h
    out_ref[...] = h


def _gru_blocked_kernel(gi_ref, h0_ref, whh_ref, bhn_ref, out_ref):
    """GRU recurrence, general path: each gate block padded to a multiple of
    128 lanes, so all gate slices are lane-aligned (no cross-lane shuffles)."""
    S = gi_ref.shape[0]
    G = whh_ref.shape[0]            # padded hidden size (multiple of 128)

    bhn_n = bhn_ref[:, 2 * G:]      # (1, G) b_hh_n (one lane-aligned slice)
    h = h0_ref[...]                 # (1, G)

    for t in range(S):
        gi = gi_ref[t:t + 1, :]                                     # (1, 3G)
        gh = jnp.dot(h.astype(whh_ref.dtype), whh_ref[...],
                     preferred_element_type=jnp.float32)            # (1, 3G)
        i_r, i_z, i_n = gi[:, :G], gi[:, G:2 * G], gi[:, 2 * G:]
        h_r, h_z, h_n = gh[:, :G], gh[:, G:2 * G], gh[:, 2 * G:]
        r = _sigmoid(i_r + h_r)
        z = _sigmoid(i_z + h_z)
        n = jnp.tanh(i_n + r * (h_n + bhn_n))
        h = (1.0 - z) * n + z * h
    out_ref[...] = h


def prepare_encoder_params(emb_table, w_ih, w_hh, b_ih, b_hh,
                           matmul_dtype=jnp.float32):
    """One-time packing of Encoder parameters into kernel-friendly layouts.

    Layout (G = gate lane stride, Wg = total gate lanes, Kp = padded hidden):
      * 3*H <= 128 (packed):  G = H,            Wg = 128,  Kp = 128
      * otherwise  (blocked): G = ceil128(H),   Wg = 3*G,  Kp = G
      emb : (vocab, H) f32
      wih : (H,  Wg)   W_ih^T, gate g at column offset g*G
      whh : (Kp, Wg)   W_hh^T, gate g at column offset g*G, rows >= H zero
      bgi : (1, Wg)    [b_ih_r+b_hh_r | b_ih_z+b_hh_z | b_ih_n]
      bhn : (1, Wg)    b_hh_n in the n block (scaled by r, cannot be folded)

    `matmul_dtype=jnp.bfloat16` enables bf16 MXU operands (f32 accumulate);
    note this will exceed a 1e-5 comparison tolerance against an f32 reference.
    """
    emb_table = jnp.asarray(emb_table, jnp.float32)
    w_ih = jnp.asarray(w_ih, jnp.float32)
    w_hh = jnp.asarray(w_hh, jnp.float32)
    b_ih = jnp.asarray(b_ih, jnp.float32)
    b_hh = jnp.asarray(b_hh, jnp.float32)

    H = emb_table.shape[1]
    packed = 3 * H <= _LANES
    G = H if packed else _round_up(H, _LANES)
    Wg = _LANES if packed else 3 * G
    Kp = _LANES if packed else G

    def pack_w(w, rows):
        out = jnp.zeros((rows, Wg), jnp.float32)
        for g in range(3):
            blk = w[g * H:(g + 1) * H, :].T            # (H_in, H_out)
            out = out.at[:H, g * G:g * G + H].set(blk)
        return out

    wih_p = pack_w(w_ih, H).astype(matmul_dtype)       # (H,  Wg)
    whh_p = pack_w(w_hh, Kp).astype(matmul_dtype)      # (Kp, Wg)

    bgi = jnp.zeros((Wg,), jnp.float32)
    bhn = jnp.zeros((Wg,), jnp.float32)
    for g in range(3):
        bi = b_ih[g * H:(g + 1) * H]
        bh = b_hh[g * H:(g + 1) * H]
        if g < 2:                                      # r, z: pre-sum biases
            bgi = bgi.at[g * G:g * G + H].set(bi + bh)
        else:                                          # n: keep b_hh_n apart
            bgi = bgi.at[g * G:g * G + H].set(bi)
            bhn = bhn.at[g * G:g * G + H].set(bh)

    return {
        "emb": emb_table,
        "wih": wih_p,
        "whh": whh_p,
        "bgi": bgi.reshape(1, Wg),
        "bhn": bhn.reshape(1, Wg),
    }


@jax.jit
def encoder_forward(tokens, hidden_state, params):
    """Mirrors Encoder.forward(input_sequence, hidden_state) -> hidden_state.

    tokens:       (S,) int32
    hidden_state: (1, 1, H) f32   (PyTorch GRU h0 layout)
    params:       dict from prepare_encoder_params (one-time packing)
    returns:      (1, 1, H) f32   final hidden state
    """
    emb, wih, whh = params["emb"], params["wih"], params["whh"]
    bgi, bhn = params["bgi"], params["bhn"]

    vocab, H = emb.shape
    S = tokens.shape[0]
    Kp, Wg = whh.shape
    packed = (Wg == _LANES)

    # Embedding gather + input-path GEMM stay in the wrapper: no recurrence
    # dependency, so XLA schedules them off the serial chain and neither the
    # (possibly huge) table nor W_ih ever enters the kernel's VMEM.
    # (clip: out-of-range tokens are clamped rather than faulting like torch.)
    tok = jnp.clip(tokens.astype(jnp.int32), 0, vocab - 1)
    x = jnp.take(emb, tok, axis=0)                                   # (S, H)
    gi_all = jnp.dot(x.astype(wih.dtype), wih,
                     preferred_element_type=jnp.float32) + bgi       # (S, Wg)

    h0 = hidden_state.reshape(1, H).astype(jnp.float32)
    h0 = jnp.pad(h0, ((0, 0), (0, Kp - H)))                          # (1, Kp)

    kernel = (functools.partial(_gru_packed_kernel, H) if packed
              else _gru_blocked_kernel)

    grid_spec = pl.GridSpec(
        grid=(1,),
        in_specs=[
            pl.BlockSpec((S, Wg), lambda i: (0, 0)),     # gi_all
            pl.BlockSpec((1, Kp), lambda i: (0, 0)),     # h0
            pl.BlockSpec((Kp, Wg), lambda i: (0, 0)),    # W_hh (packed)
            pl.BlockSpec((1, Wg), lambda i: (0, 0)),     # b_hh_n
        ],
        out_specs=pl.BlockSpec((1, Kp), lambda i: (0, 0)),
    )

    # grid=(1,) => nothing to pipeline; size scoped VMEM to the real footprint
    # (Pallas still allocates 2 buffers per BlockSpec, hence the factor of 2).
    def nbytes(a):
        return a.size * a.dtype.itemsize
    footprint = 2 * (nbytes(gi_all) + nbytes(h0) + nbytes(whh) + nbytes(bhn)
                     + Kp * 4)
    vmem_limit = int(min(max(2 * footprint, 4 << 20), 64 << 20))

    h_final = pl.pallas_call(
        kernel,
        out_shape=jax.ShapeDtypeStruct((1, Kp), jnp.float32),
        grid_spec=grid_spec,
        compiler_params=pltpu.CompilerParams(
            dimension_semantics=("arbitrary",),
            vmem_limit_bytes=vmem_limit),
    )(gi_all, h0, whh, bhn)

    # TODO(synk): if a batch of sequences is added, lift batch onto the LHS M
    # dim of both matmuls and expose it as a "parallel" grid axis (shards
    # across v7x's two TensorCores and raises MXU occupancy).
    return h_final[:, :H].reshape(1, 1, H)


def encoder_reference(tokens, emb_table, hidden_state, w_ih, w_hh, b_ih, b_hh):
    """Pure-JAX reference implementing torch.nn.GRU (single layer) semantics."""
    H = emb_table.shape[1]
    h = hidden_state.reshape(H)

    def step(h, tok):
        x = emb_table[tok]
        gi = w_ih @ x + b_ih
        gh = w_hh @ h + b_hh
        i_r, i_z, i_n = gi[:H], gi[H:2 * H], gi[2 * H:]
        h_r, h_z, h_n = gh[:H], gh[H:2 * H], gh[2 * H:]
        r = jax.nn.sigmoid(i_r + h_r)
        z = jax.nn.sigmoid(i_z + h_z)
        n = jnp.tanh(i_n + r * h_n)
        h_new = (1.0 - z) * n + z * h
        return h_new, None

    h_final, _ = lax.scan(step, h, tokens)
    return h_final.reshape(1, 1, H)


if __name__ == "__main__":
    vocab_size = 20
    hidden_size = 32
    seq_len = 8

    key = jax.random.PRNGKey(0)
    k_emb, k_wih, k_whh, k_bih, k_bhh, k_tok = jax.random.split(key, 6)

    # Deterministic parameter init (matching PyTorch init distributions in spirit):
    #   nn.Embedding ~ N(0, 1); nn.GRU params ~ U(-1/sqrt(H), 1/sqrt(H)).
    bound = 1.0 / jnp.sqrt(jnp.float32(hidden_size))
    emb_table = jax.random.normal(k_emb, (vocab_size, hidden_size), jnp.float32)
    w_ih = jax.random.uniform(k_wih, (3 * hidden_size, hidden_size),
                              jnp.float32, -bound, bound)
    w_hh = jax.random.uniform(k_whh, (3 * hidden_size, hidden_size),
                              jnp.float32, -bound, bound)
    b_ih = jax.random.uniform(k_bih, (3 * hidden_size,), jnp.float32, -bound, bound)
    b_hh = jax.random.uniform(k_bhh, (3 * hidden_size,), jnp.float32, -bound, bound)

    tokens = jax.random.randint(k_tok, (seq_len,), 0, vocab_size, jnp.int32)
    hidden0 = jnp.zeros((1, 1, hidden_size), jnp.float32)  # initialize_hidden_state()

    # One-time parameter packing (kept out of the per-call jit path).
    params = prepare_encoder_params(emb_table, w_ih, w_hh, b_ih, b_hh)

    h_out = encoder_forward(tokens, hidden0, params)
    jax.block_until_ready(h_out)

    h_ref = encoder_reference(tokens, emb_table, hidden0, w_ih, w_hh, b_ih, b_hh)
    assert h_out.shape == (1, 1, hidden_size)
    assert jnp.allclose(h_out, h_ref, atol=1e-5, rtol=1e-5)

    print("KERNEL_OK")
</pallas_src>

<mosaic_0001>
module attributes {stable_mosaic.version = 11 : i64} {
  func.func @_gru_packed_kernel(%arg0: i32, %arg1: memref<8x128xf32, #tpu.memory_space<vmem>>, %arg2: memref<1x128xf32, #tpu.memory_space<vmem>>, %arg3: memref<128x128xf32, #tpu.memory_space<vmem>>, %arg4: memref<1x128xf32, #tpu.memory_space<vmem>>, %arg5: memref<1x128xf32, #tpu.memory_space<vmem>>) attributes {dimension_semantics = [#tpu.dimension_semantics<arbitrary>], iteration_bounds = array<i64: 1>, scalar_prefetch = 0 : i64, scratch_operands = 0 : i64, tpu.core_type = #tpu.core_type<tc>, window_params = [{pipeline_mode = #tpu.pipeline_mode<synchronous>, transform_indices = @transform_0, window_bounds = array<i64: 8, 128>}, {pipeline_mode = #tpu.pipeline_mode<synchronous>, transform_indices = @transform_1, window_bounds = array<i64: 1, 128>}, {pipeline_mode = #tpu.pipeline_mode<synchronous>, transform_indices = @transform_2, window_bounds = array<i64: 128, 128>}, {pipeline_mode = #tpu.pipeline_mode<synchronous>, transform_indices = @transform_3, window_bounds = array<i64: 1, 128>}, {pipeline_mode = #tpu.pipeline_mode<synchronous>, transform_indices = @transform_4, window_bounds = array<i64: 1, 128>}]} {
    %c0 = arith.constant 0 : index
    %c0_0 = arith.constant 0 : index
    %0 = vector.load %arg4[%c0, %c0_0] : memref<1x128xf32, #tpu.memory_space<vmem>>, vector<1x128xf32>
    %c0_1 = arith.constant 0 : index
    %c0_2 = arith.constant 0 : index
    %1 = vector.load %arg2[%c0_1, %c0_2] : memref<1x128xf32, #tpu.memory_space<vmem>>, vector<1x128xf32>
    %c0_3 = arith.constant 0 : index
    %c0_4 = arith.constant 0 : index
    %2 = vector.load %arg1[%c0_3, %c0_4] : memref<8x128xf32, #tpu.memory_space<vmem>>, vector<1x128xf32>
    %c0_5 = arith.constant 0 : index
    %c0_6 = arith.constant 0 : index
    %3 = vector.load %arg3[%c0_5, %c0_6] : memref<128x128xf32, #tpu.memory_space<vmem>>, vector<128x128xf32>
    %cst = arith.constant dense<0.000000e+00> : vector<1x128xf32>
    %4 = tpu.matmul %1, %3, %cst {dimension_numbers = #tpu.dot_dimension_numbers<[1], [0], [0], [1], [0, 0, 1, 1], [], []>} : vector<1x128xf32>, vector<128x128xf32>, vector<1x128xf32> -> vector<1x128xf32>
    %5 = arith.addf %2, %4 : vector<1x128xf32>
    %cst_7 = arith.constant 5.000000e-01 : f32
    %6 = vector.broadcast %cst_7 : f32 to vector<1x128xf32>
    %7 = arith.mulf %6, %5 : vector<1x128xf32>
    %8 = math.tanh %7 : vector<1x128xf32>
    %cst_8 = arith.constant 5.000000e-01 : f32
    %9 = vector.broadcast %cst_8 : f32 to vector<1x128xf32>
    %10 = arith.mulf %9, %8 : vector<1x128xf32>
    %cst_9 = arith.constant 5.000000e-01 : f32
    %11 = vector.broadcast %cst_9 : f32 to vector<1x128xf32>
    %12 = arith.addf %10, %11 : vector<1x128xf32>
    %c64_i32 = arith.constant 64 : i32
    %13 = tpu.dynamic_rotate %12 by %c64_i32 dim 1 : vector<1x128xf32>, i32 -> vector<1x128xf32>
    %14 = arith.addf %4, %0 : vector<1x128xf32>
    %15 = arith.mulf %13, %14 : vector<1x128xf32>
    %16 = arith.addf %2, %15 : vector<1x128xf32>
    %17 = math.tanh %16 : vector<1x128xf32>
    %c96_i32 = arith.constant 96 : i32
    %18 = tpu.dynamic_rotate %12 by %c96_i32 dim 1 : vector<1x128xf32>, i32 -> vector<1x128xf32>
    %c64_i32_10 = arith.constant 64 : i32
    %19 = tpu.dynamic_rotate %17 by %c64_i32_10 dim 1 : vector<1x128xf32>, i32 -> vector<1x128xf32>
    %cst_11 = arith.constant 1.000000e+00 : f32
    %20 = vector.broadcast %cst_11 : f32 to vector<1x128xf32>
    %21 = arith.subf %20, %18 : vector<1x128xf32>
    %22 = arith.mulf %21, %19 : vector<1x128xf32>
    %23 = arith.mulf %18, %1 : vector<1x128xf32>
    %24 = arith.addf %22, %23 : vector<1x128xf32>
    %c1 = arith.constant 1 : index
    %c0_12 = arith.constant 0 : index
    %25 = vector.load %arg1[%c1, %c0_12] : memref<8x128xf32, #tpu.memory_space<vmem>>, vector<1x128xf32>
    %c0_13 = arith.constant 0 : index
    %c0_14 = arith.constant 0 : index
    %26 = vector.load %arg3[%c0_13, %c0_14] : memref<128x128xf32, #tpu.memory_space<vmem>>, vector<128x128xf32>
    %cst_15 = arith.constant dense<0.000000e+00> : vector<1x128xf32>
    %27 = tpu.matmul %24, %26, %cst_15 {dimension_numbers = #tpu.dot_dimension_numbers<[1], [0], [0], [1], [0, 0, 1, 1], [], []>} : vector<1x128xf32>, vector<128x128xf32>, vector<1x128xf32> -> vector<1x128xf32>
    %28 = arith.addf %25, %27 : vector<1x128xf32>
    %cst_16 = arith.constant 5.000000e-01 : f32
    %29 = vector.broadcast %cst_16 : f32 to vector<1x128xf32>
    %30 = arith.mulf %29, %28 : vector<1x128xf32>
    %31 = math.tanh %30 : vector<1x128xf32>
    %cst_17 = arith.constant 5.000000e-01 : f32
    %32 = vector.broadcast %cst_17 : f32 to vector<1x128xf32>
    %33 = arith.mulf %32, %31 : vector<1x128xf32>
    %cst_18 = arith.constant 5.000000e-01 : f32
    %34 = vector.broadcast %cst_18 : f32 to vector<1x128xf32>
    %35 = arith.addf %33, %34 : vector<1x128xf32>
    %c64_i32_19 = arith.constant 64 : i32
    %36 = tpu.dynamic_rotate %35 by %c64_i32_19 dim 1 : vector<1x128xf32>, i32 -> vector<1x128xf32>
    %37 = arith.addf %27, %0 : vector<1x128xf32>
    %38 = arith.mulf %36, %37 : vector<1x128xf32>
    %39 = arith.addf %25, %38 : vector<1x128xf32>
    %40 = math.tanh %39 : vector<1x128xf32>
    %c96_i32_20 = arith.constant 96 : i32
    %41 = tpu.dynamic_rotate %35 by %c96_i32_20 dim 1 : vector<1x128xf32>, i32 -> vector<1x128xf32>
    %c64_i32_21 = arith.constant 64 : i32
    %42 = tpu.dynamic_rotate %40 by %c64_i32_21 dim 1 : vector<1x128xf32>, i32 -> vector<1x128xf32>
    %cst_22 = arith.constant 1.000000e+00 : f32
    %43 = vector.broadcast %cst_22 : f32 to vector<1x128xf32>
    %44 = arith.subf %43, %41 : vector<1x128xf32>
    %45 = arith.mulf %44, %42 : vector<1x128xf32>
    %46 = arith.mulf %41, %24 : vector<1x128xf32>
    %47 = arith.addf %45, %46 : vector<1x128xf32>
    %c2 = arith.constant 2 : index
    %c0_23 = arith.constant 0 : index
    %48 = vector.load %arg1[%c2, %c0_23] : memref<8x128xf32, #tpu.memory_space<vmem>>, vector<1x128xf32>
    %c0_24 = arith.constant 0 : index
    %c0_25 = arith.constant 0 : index
    %49 = vector.load %arg3[%c0_24, %c0_25] : memref<128x128xf32, #tpu.memory_space<vmem>>, vector<128x128xf32>
    %cst_26 = arith.constant dense<0.000000e+00> : vector<1x128xf32>
    %50 = tpu.matmul %47, %49, %cst_26 {dimension_numbers = #tpu.dot_dimension_numbers<[1], [0], [0], [1], [0, 0, 1, 1], [], []>} : vector<1x128xf32>, vector<128x128xf32>, vector<1x128xf32> -> vector<1x128xf32>
    %51 = arith.addf %48, %50 : vector<1x128xf32>
    %cst_27 = arith.constant 5.000000e-01 : f32
    %52 = vector.broadcast %cst_27 : f32 to vector<1x128xf32>
    %53 = arith.mulf %52, %51 : vector<1x128xf32>
    %54 = math.tanh %53 : vector<1x128xf32>
    %cst_28 = arith.constant 5.000000e-01 : f32
    %55 = vector.broadcast %cst_28 : f32 to vector<1x128xf32>
    %56 = arith.mulf %55, %54 : vector<1x128xf32>
    %cst_29 = arith.constant 5.000000e-01 : f32
    %57 = vector.broadcast %cst_29 : f32 to vector<1x128xf32>
    %58 = arith.addf %56, %57 : vector<1x128xf32>
    %c64_i32_30 = arith.constant 64 : i32
    %59 = tpu.dynamic_rotate %58 by %c64_i32_30 dim 1 : vector<1x128xf32>, i32 -> vector<1x128xf32>
    %60 = arith.addf %50, %0 : vector<1x128xf32>
    %61 = arith.mulf %59, %60 : vector<1x128xf32>
    %62 = arith.addf %48, %61 : vector<1x128xf32>
    %63 = math.tanh %62 : vector<1x128xf32>
    %c96_i32_31 = arith.constant 96 : i32
    %64 = tpu.dynamic_rotate %58 by %c96_i32_31 dim 1 : vector<1x128xf32>, i32 -> vector<1x128xf32>
    %c64_i32_32 = arith.constant 64 : i32
    %65 = tpu.dynamic_rotate %63 by %c64_i32_32 dim 1 : vector<1x128xf32>, i32 -> vector<1x128xf32>
    %cst_33 = arith.constant 1.000000e+00 : f32
    %66 = vector.broadcast %cst_33 : f32 to vector<1x128xf32>
    %67 = arith.subf %66, %64 : vector<1x128xf32>
    %68 = arith.mulf %67, %65 : vector<1x128xf32>
    %69 = arith.mulf %64, %47 : vector<1x128xf32>
    %70 = arith.addf %68, %69 : vector<1x128xf32>
    %c3 = arith.constant 3 : index
    %c0_34 = arith.constant 0 : index
    %71 = vector.load %arg1[%c3, %c0_34] : memref<8x128xf32, #tpu.memory_space<vmem>>, vector<1x128xf32>
    %c0_35 = arith.constant 0 : index
    %c0_36 = arith.constant 0 : index
    %72 = vector.load %arg3[%c0_35, %c0_36] : memref<128x128xf32, #tpu.memory_space<vmem>>, vector<128x128xf32>
    %cst_37 = arith.constant dense<0.000000e+00> : vector<1x128xf32>
    %73 = tpu.matmul %70, %72, %cst_37 {dimension_numbers = #tpu.dot_dimension_numbers<[1], [0], [0], [1], [0, 0, 1, 1], [], []>} : vector<1x128xf32>, vector<128x128xf32>, vector<1x128xf32> -> vector<1x128xf32>
    %74 = arith.addf %71, %73 : vector<1x128xf32>
    %cst_38 = arith.constant 5.000000e-01 : f32
    %75 = vector.broadcast %cst_38 : f32 to vector<1x128xf32>
    %76 = arith.mulf %75, %74 : vector<1x128xf32>
    %77 = math.tanh %76 : vector<1x128xf32>
    %cst_39 = arith.constant 5.000000e-01 : f32
    %78 = vector.broadcast %cst_39 : f32 to vector<1x128xf32>
    %79 = arith.mulf %78, %77 : vector<1x128xf32>
    %cst_40 = arith.constant 5.000000e-01 : f32
    %80 = vector.broadcast %cst_40 : f32 to vector<1x128xf32>
    %81 = arith.addf %79, %80 : vector<1x128xf32>
    %c64_i32_41 = arith.constant 64 : i32
    %82 = tpu.dynamic_rotate %81 by %c64_i32_41 dim 1 : vector<1x128xf32>, i32 -> vector<1x128xf32>
    %83 = arith.addf %73, %0 : vector<1x128xf32>
    %84 = arith.mulf %82, %83 : vector<1x128xf32>
    %85 = arith.addf %71, %84 : vector<1x128xf32>
    %86 = math.tanh %85 : vector<1x128xf32>
    %c96_i32_42 = arith.constant 96 : i32
    %87 = tpu.dynamic_rotate %81 by %c96_i32_42 dim 1 : vector<1x128xf32>, i32 -> vector<1x128xf32>
    %c64_i32_43 = arith.constant 64 : i32
    %88 = tpu.dynamic_rotate %86 by %c64_i32_43 dim 1 : vector<1x128xf32>, i32 -> vector<1x128xf32>
    %cst_44 = arith.constant 1.000000e+00 : f32
    %89 = vector.broadcast %cst_44 : f32 to vector<1x128xf32>
    %90 = arith.subf %89, %87 : vector<1x128xf32>
    %91 = arith.mulf %90, %88 : vector<1x128xf32>
    %92 = arith.mulf %87, %70 : vector<1x128xf32>
    %93 = arith.addf %91, %92 : vector<1x128xf32>
    %c4 = arith.constant 4 : index
    %c0_45 = arith.constant 0 : index
    %94 = vector.load %arg1[%c4, %c0_45] : memref<8x128xf32, #tpu.memory_space<vmem>>, vector<1x128xf32>
    %c0_46 = arith.constant 0 : index
    %c0_47 = arith.constant 0 : index
    %95 = vector.load %arg3[%c0_46, %c0_47] : memref<128x128xf32, #tpu.memory_space<vmem>>, vector<128x128xf32>
    %cst_48 = arith.constant dense<0.000000e+00> : vector<1x128xf32>
    %96 = tpu.matmul %93, %95, %cst_48 {dimension_numbers = #tpu.dot_dimension_numbers<[1], [0], [0], [1], [0, 0, 1, 1], [], []>} : vector<1x128xf32>, vector<128x128xf32>, vector<1x128xf32> -> vector<1x128xf32>
    %97 = arith.addf %94, %96 : vector<1x128xf32>
    %cst_49 = arith.constant 5.000000e-01 : f32
    %98 = vector.broadcast %cst_49 : f32 to vector<1x128xf32>
    %99 = arith.mulf %98, %97 : vector<1x128xf32>
    %100 = math.tanh %99 : vector<1x128xf32>
    %cst_50 = arith.constant 5.000000e-01 : f32
    %101 = vector.broadcast %cst_50 : f32 to vector<1x128xf32>
    %102 = arith.mulf %101, %100 : vector<1x128xf32>
    %cst_51 = arith.constant 5.000000e-01 : f32
    %103 = vector.broadcast %cst_51 : f32 to vector<1x128xf32>
    %104 = arith.addf %102, %103 : vector<1x128xf32>
    %c64_i32_52 = arith.constant 64 : i32
    %105 = tpu.dynamic_rotate %104 by %c64_i32_52 dim 1 : vector<1x128xf32>, i32 -> vector<1x128xf32>
    %106 = arith.addf %96, %0 : vector<1x128xf32>
    %107 = arith.mulf %105, %106 : vector<1x128xf32>
    %108 = arith.addf %94, %107 : vector<1x128xf32>
    %109 = math.tanh %108 : vector<1x128xf32>
    %c96_i32_53 = arith.constant 96 : i32
    %110 = tpu.dynamic_rotate %104 by %c96_i32_53 dim 1 : vector<1x128xf32>, i32 -> vector<1x128xf32>
    %c64_i32_54 = arith.constant 64 : i32
    %111 = tpu.dynamic_rotate %109 by %c64_i32_54 dim 1 : vector<1x128xf32>, i32 -> vector<1x128xf32>
    %cst_55 = arith.constant 1.000000e+00 : f32
    %112 = vector.broadcast %cst_55 : f32 to vector<1x128xf32>
    %113 = arith.subf %112, %110 : vector<1x128xf32>
    %114 = arith.mulf %113, %111 : vector<1x128xf32>
    %115 = arith.mulf %110, %93 : vector<1x128xf32>
    %116 = arith.addf %114, %115 : vector<1x128xf32>
    %c5 = arith.constant 5 : index
    %c0_56 = arith.constant 0 : index
    %117 = vector.load %arg1[%c5, %c0_56] : memref<8x128xf32, #tpu.memory_space<vmem>>, vector<1x128xf32>
    %c0_57 = arith.constant 0 : index
    %c0_58 = arith.constant 0 : index
    %118 = vector.load %arg3[%c0_57, %c0_58] : memref<128x128xf32, #tpu.memory_space<vmem>>, vector<128x128xf32>
    %cst_59 = arith.constant dense<0.000000e+00> : vector<1x128xf32>
    %119 = tpu.matmul %116, %118, %cst_59 {dimension_numbers = #tpu.dot_dimension_numbers<[1], [0], [0], [1], [0, 0, 1, 1], [], []>} : vector<1x128xf32>, vector<128x128xf32>, vector<1x128xf32> -> vector<1x128xf32>
    %120 = arith.addf %117, %119 : vector<1x128xf32>
    %cst_60 = arith.constant 5.000000e-01 : f32
    %121 = vector.broadcast %cst_60 : f32 to vector<1x128xf32>
    %122 = arith.mulf %121, %120 : vector<1x128xf32>
    %123 = math.tanh %122 : vector<1x128xf32>
    %cst_61 = arith.constant 5.000000e-01 : f32
    %124 = vector.broadcast %cst_61 : f32 to vector<1x128xf32>
    %125 = arith.mulf %124, %123 : vector<1x128xf32>
    %cst_62 = arith.constant 5.000000e-01 : f32
    %126 = vector.broadcast %cst_62 : f32 to vector<1x128xf32>
    %127 = arith.addf %125, %126 : vector<1x128xf32>
    %c64_i32_63 = arith.constant 64 : i32
    %128 = tpu.dynamic_rotate %127 by %c64_i32_63 dim 1 : vector<1x128xf32>, i32 -> vector<1x128xf32>
    %129 = arith.addf %119, %0 : vector<1x128xf32>
    %130 = arith.mulf %128, %129 : vector<1x128xf32>
    %131 = arith.addf %117, %130 : vector<1x128xf32>
    %132 = math.tanh %131 : vector<1x128xf32>
    %c96_i32_64 = arith.constant 96 : i32
    %133 = tpu.dynamic_rotate %127 by %c96_i32_64 dim 1 : vector<1x128xf32>, i32 -> vector<1x128xf32>
    %c64_i32_65 = arith.constant 64 : i32
    %134 = tpu.dynamic_rotate %132 by %c64_i32_65 dim 1 : vector<1x128xf32>, i32 -> vector<1x128xf32>
    %cst_66 = arith.constant 1.000000e+00 : f32
    %135 = vector.broadcast %cst_66 : f32 to vector<1x128xf32>
    %136 = arith.subf %135, %133 : vector<1x128xf32>
    %137 = arith.mulf %136, %134 : vector<1x128xf32>
    %138 = arith.mulf %133, %116 : vector<1x128xf32>
    %139 = arith.addf %137, %138 : vector<1x128xf32>
    %c6 = arith.constant 6 : index
    %c0_67 = arith.constant 0 : index
    %140 = vector.load %arg1[%c6, %c0_67] : memref<8x128xf32, #tpu.memory_space<vmem>>, vector<1x128xf32>
    %c0_68 = arith.constant 0 : index
    %c0_69 = arith.constant 0 : index
    %141 = vector.load %arg3[%c0_68, %c0_69] : memref<128x128xf32, #tpu.memory_space<vmem>>, vector<128x128xf32>
    %cst_70 = arith.constant dense<0.000000e+00> : vector<1x128xf32>
    %142 = tpu.matmul %139, %141, %cst_70 {dimension_numbers = #tpu.dot_dimension_numbers<[1], [0], [0], [1], [0, 0, 1, 1], [], []>} : vector<1x128xf32>, vector<128x128xf32>, vector<1x128xf32> -> vector<1x128xf32>
    %143 = arith.addf %140, %142 : vector<1x128xf32>
    %cst_71 = arith.constant 5.000000e-01 : f32
    %144 = vector.broadcast %cst_71 : f32 to vector<1x128xf32>
    %145 = arith.mulf %144, %143 : vector<1x128xf32>
    %146 = math.tanh %145 : vector<1x128xf32>
    %cst_72 = arith.constant 5.000000e-01 : f32
    %147 = vector.broadcast %cst_72 : f32 to vector<1x128xf32>
    %148 = arith.mulf %147, %146 : vector<1x128xf32>
    %cst_73 = arith.constant 5.000000e-01 : f32
    %149 = vector.broadcast %cst_73 : f32 to vector<1x128xf32>
    %150 = arith.addf %148, %149 : vector<1x128xf32>
    %c64_i32_74 = arith.constant 64 : i32
    %151 = tpu.dynamic_rotate %150 by %c64_i32_74 dim 1 : vector<1x128xf32>, i32 -> vector<1x128xf32>
    %152 = arith.addf %142, %0 : vector<1x128xf32>
    %153 = arith.mulf %151, %152 : vector<1x128xf32>
    %154 = arith.addf %140, %153 : vector<1x128xf32>
    %155 = math.tanh %154 : vector<1x128xf32>
    %c96_i32_75 = arith.constant 96 : i32
    %156 = tpu.dynamic_rotate %150 by %c96_i32_75 dim 1 : vector<1x128xf32>, i32 -> vector<1x128xf32>
    %c64_i32_76 = arith.constant 64 : i32
    %157 = tpu.dynamic_rotate %155 by %c64_i32_76 dim 1 : vector<1x128xf32>, i32 -> vector<1x128xf32>
    %cst_77 = arith.constant 1.000000e+00 : f32
    %158 = vector.broadcast %cst_77 : f32 to vector<1x128xf32>
    %159 = arith.subf %158, %156 : vector<1x128xf32>
    %160 = arith.mulf %159, %157 : vector<1x128xf32>
    %161 = arith.mulf %156, %139 : vector<1x128xf32>
    %162 = arith.addf %160, %161 : vector<1x128xf32>
    %c7 = arith.constant 7 : index
    %c0_78 = arith.constant 0 : index
    %163 = vector.load %arg1[%c7, %c0_78] : memref<8x128xf32, #tpu.memory_space<vmem>>, vector<1x128xf32>
    %c0_79 = arith.constant 0 : index
    %c0_80 = arith.constant 0 : index
    %164 = vector.load %arg3[%c0_79, %c0_80] : memref<128x128xf32, #tpu.memory_space<vmem>>, vector<128x128xf32>
    %cst_81 = arith.constant dense<0.000000e+00> : vector<1x128xf32>
    %165 = tpu.matmul %162, %164, %cst_81 {dimension_numbers = #tpu.dot_dimension_numbers<[1], [0], [0], [1], [0, 0, 1, 1], [], []>} : vector<1x128xf32>, vector<128x128xf32>, vector<1x128xf32> -> vector<1x128xf32>
    %166 = arith.addf %163, %165 : vector<1x128xf32>
    %cst_82 = arith.constant 5.000000e-01 : f32
    %167 = vector.broadcast %cst_82 : f32 to vector<1x128xf32>
    %168 = arith.mulf %167, %166 : vector<1x128xf32>
    %169 = math.tanh %168 : vector<1x128xf32>
    %cst_83 = arith.constant 5.000000e-01 : f32
    %170 = vector.broadcast %cst_83 : f32 to vector<1x128xf32>
    %171 = arith.mulf %170, %169 : vector<1x128xf32>
    %cst_84 = arith.constant 5.000000e-01 : f32
    %172 = vector.broadcast %cst_84 : f32 to vector<1x128xf32>
    %173 = arith.addf %171, %172 : vector<1x128xf32>
    %c64_i32_85 = arith.constant 64 : i32
    %174 = tpu.dynamic_rotate %173 by %c64_i32_85 dim 1 : vector<1x128xf32>, i32 -> vector<1x128xf32>
    %175 = arith.addf %165, %0 : vector<1x128xf32>
    %176 = arith.mulf %174, %175 : vector<1x128xf32>
    %177 = arith.addf %163, %176 : vector<1x128xf32>
    %178 = math.tanh %177 : vector<1x128xf32>
    %c96_i32_86 = arith.constant 96 : i32
    %179 = tpu.dynamic_rotate %173 by %c96_i32_86 dim 1 : vector<1x128xf32>, i32 -> vector<1x128xf32>
    %c64_i32_87 = arith.constant 64 : i32
    %180 = tpu.dynamic_rotate %178 by %c64_i32_87 dim 1 : vector<1x128xf32>, i32 -> vector<1x128xf32>
    %cst_88 = arith.constant 1.000000e+00 : f32
    %181 = vector.broadcast %cst_88 : f32 to vector<1x128xf32>
    %182 = arith.subf %181, %179 : vector<1x128xf32>
    %183 = arith.mulf %182, %180 : vector<1x128xf32>
    %184 = arith.mulf %179, %162 : vector<1x128xf32>
    %185 = arith.addf %183, %184 : vector<1x128xf32>
    %c0_89 = arith.constant 0 : index
    %c0_90 = arith.constant 0 : index
    %186 = vector.load %arg5[%c0_89, %c0_90] : memref<1x128xf32, #tpu.memory_space<vmem>>, vector<1x128xf32>
    tpu.vector_store %arg5[%c0_89, %c0_90], %185 {strides = array<i32>} : memref<1x128xf32, #tpu.memory_space<vmem>>, vector<1x128xf32>,
    return
  }
  func.func @transform_0(%arg0: i32) -> (i32, i32) {
    %c0_i32 = arith.constant 0 : i32
    %c0_i32_0 = arith.constant 0 : i32
    %c0_i32_1 = arith.constant 0 : i32
    return %c0_i32, %c0_i32_0 : i32, i32
  }
  func.func @transform_1(%arg0: i32) -> (i32, i32) {
    %c0_i32 = arith.constant 0 : i32
    %c0_i32_0 = arith.constant 0 : i32
    %c0_i32_1 = arith.constant 0 : i32
    return %c0_i32, %c0_i32_0 : i32, i32
  }
  func.func @transform_2(%arg0: i32) -> (i32, i32) {
    %c0_i32 = arith.constant 0 : i32
    %c0_i32_0 = arith.constant 0 : i32
    %c0_i32_1 = arith.constant 0 : i32
    return %c0_i32, %c0_i32_0 : i32, i32
  }
  func.func @transform_3(%arg0: i32) -> (i32, i32) {
    %c0_i32 = arith.constant 0 : i32
    %c0_i32_0 = arith.constant 0 : i32
    %c0_i32_1 = arith.constant 0 : i32
    return %c0_i32, %c0_i32_0 : i32, i32
  }
  func.func @transform_4(%arg0: i32) -> (i32, i32) {
    %c0_i32 = arith.constant 0 : i32
    %c0_i32_0 = arith.constant 0 : i32
    %c0_i32_1 = arith.constant 0 : i32
    return %c0_i32, %c0_i32_0 : i32, i32
  }
}

</mosaic_0001>

<bundles_post_ra>
// kernel: encoder_forward.1
= control target key start
LH: loop header
LB: loop body
LE: loop exit
PB: predicated region body
PF: predicated region fallthrough
CT: control target
= control target key end

     0   :  { %9 = vsyncpa [#allocation3], 0  ;;  %s1252_s15 = smov [#allocation2]   ;;  %s1662_s0 = inlined_call_operand.vmem [shape: f32[8,128], index: 0, kind: input, shape index: {}]   ;;  %s1663_s1 = inlined_call_operand.vmem [shape: f32[1,128], index: 1, kind: input, shape index: {}]   ;;  %s1664_s2 = inlined_call_operand.hbm [shape: f32[128,128], index: 2, kind: input, shape index: {}]   ;;  %s1665_s3 = inlined_call_operand.vmem [shape: f32[1,128], index: 3, kind: input, shape index: {}]   ;;  %s1666_s4 = inlined_call_operand.vmem [shape: f32[1,128], index: 4, kind: output, shape index: {}]  }
   0x1   :  { %s19_s16 = sshll.u32 %s1252_s15, 4  ;;  %s20_s16 = int_to_ptr.vmem [resolvable:$true] %s19_s16 }
   0x2   :  { %s1238_s17 = scalar_lea.vmem %s20_s16, 2048  ;;  %p1243_p1 = scmp.lt.s32.totalorder %s20_s16, %s20_s16 }
   0x3   :  { %p1239_p0 = scmp.ne.s32.totalorder %s20_s16, %s1238_s17  ;;  %p1244_p2 = scmp.lt.s32.totalorder %s1238_s17, %s1238_s17 }
   0x5   :  { %p1245_p3 = por %p1244_p2, %p1243_p1 }
   0x7   :  { %p1246_p4 = pnand %p1245_p3, %p1239_p0 }
   0x9   :  { %1249 = shalt.err (!%p1246_p4)
}
   0xa   :  { %s1253_s18 = smov 128   ;;  %s1254_s19 = smov 8  }
   0xb   :  { %25 = dma.hbm_to_vmem [thread:$0]  %s1664_s2, 2048, %s20_s16, [#allocation3], %s1253_s18, %s1253_s18, %s1254_s19  }
   0xc   :  { %1250 = dma.done.wait [#allocation3], 2048  }
   0xd   :  { %1251 = vsyncadd [#allocation3], 4294965248  ;;  %v1255_v0 = vmov 0.0   ;;  %vm1256_vm0 = vmmov 0   ;;  %v1293_v1 = vld [vmem:[#allocation2 + $0x78] sm:$0xff]  ;;  %v1295_v2 = vld [vmem:[#allocation2 + $0x70] sm:$0xff] }
   0xe   :  { %911 = vmatprep.subr.mxu0 %v1255_v0  ;;  %943 = vmatprep.mubr.msk.f32.mxu0 %vm1256_vm0, %v1255_v0  ;;  %v1300_v3 = vld [vmem:[#allocation2 + $0x68] sm:$0xff]  ;;  %v1306_v4 = vld [vmem:[#allocation2 + $0x60] sm:$0xff]  ;;  %v1312_v5 = vld [vmem:[#allocation2 + $0x58] sm:$0xff]  ;;  %s1257_s24 = smov 64   ;;  %s1258_s25 = smov 96  }
   0xf   :  { %946 = vmatprep.subr.mxu1 %v1255_v0  ;;  %978 = vmatprep.mubr.msk.f32.mxu1 %vm1256_vm0, %v1255_v0  ;;  %v1318_v6 = vld [vmem:[#allocation2 + $0x50] sm:$0xff]  ;;  %v1324_v7 = vld [vmem:[#allocation2 + $0x48] sm:$0xff]  ;;  %v1330_v8 = vld [vmem:[#allocation2 + $0x40] sm:$0xff] }
  0x10   :  { %912 = vmatpush3.msra.mxu0 %v1293_v1  ;;  %947 = vmatpush3.msra.mxu1 %v1293_v1  ;;  %v1336_v9 = vld [vmem:[#allocation2 + $0x38] sm:$0xff]  ;;  %v1342_v10 = vld [vmem:[#allocation2 + $0x30] sm:$0xff]  ;;  %v1348_v11 = vld [vmem:[#allocation2 + $0x28] sm:$0xff] }
  0x11   :  { %913 = vmatprep.subr.mxu0 %v1255_v0  ;;  %948 = vmatprep.subr.mxu1 %v1255_v0  ;;  %v1354_v12 = vld [vmem:[#allocation2 + $0x20] sm:$0xff]  ;;  %v1360_v13 = vld [vmem:[#allocation2 + $0x18] sm:$0xff]  ;;  %v1366_v14 = vld [vmem:[#allocation2 + $0x10] sm:$0xff] }
  0x12   :  { %914 = vmatpush3.msra.mxu0 %v1295_v2  ;;  %949 = vmatpush3.msra.mxu1 %v1295_v2  ;;  %v1372_v15 = vld [vmem:[#allocation2 + $0x8] sm:$0xff]  ;;  %v1378_v16 = vld [vmem:[#allocation2] sm:$0xff] }
  0x13   :  { %915 = vmatprep.subr.mxu0 %v1255_v0  ;;  %950 = vmatprep.subr.mxu1 %v1255_v0  ;;  %v1385_v17 = vld [vmem:[%s1663_s1] sm:$0x1]  ;;  %v139_v38 = vld [vmem:[%s1662_s0 + $0x1] sm:$0x1]  ;;  %v229_v57 = vld [vmem:[%s1662_s0 + $0x2] sm:$0x1] }
  0x14   :  { %916 = vmatpush3.msra.mxu0 %v1300_v3  ;;  %951 = vmatpush3.msra.mxu1 %v1300_v3  ;;  %v33_v18 = vld [vmem:[%s1662_s0] sm:$0x1] }
  0x15   :  { %917 = vmatprep.subr.mxu0 %v1255_v0  ;;  %952 = vmatprep.subr.mxu1 %v1255_v0  ;;  %v1437_v26 = vld [vmem:[%s1665_s3] sm:$0x1] }
  0x16   :  { %918 = vmatpush3.msra.mxu0 %v1306_v4  ;;  %953 = vmatpush3.msra.mxu1 %v1306_v4 }
  0x17   :  { %919 = vmatprep.subr.mxu0 %v1255_v0  ;;  %954 = vmatprep.subr.mxu1 %v1255_v0 }
  0x18   :  { %920 = vmatpush3.msra.mxu0 %v1312_v5  ;;  %955 = vmatpush3.msra.mxu1 %v1312_v5 }
  0x19   :  { %921 = vmatprep.subr.mxu0 %v1255_v0  ;;  %956 = vmatprep.subr.mxu1 %v1255_v0 }
  0x1a   :  { %922 = vmatpush3.msra.mxu0 %v1318_v6  ;;  %957 = vmatpush3.msra.mxu1 %v1318_v6 }
  0x1b   :  { %923 = vmatprep.subr.mxu0 %v1255_v0  ;;  %958 = vmatprep.subr.mxu1 %v1255_v0 }
  0x1c   :  { %924 = vmatpush3.msra.mxu0 %v1324_v7  ;;  %959 = vmatpush3.msra.mxu1 %v1324_v7 }
  0x1d   :  { %925 = vmatprep.subr.mxu0 %v1255_v0  ;;  %960 = vmatprep.subr.mxu1 %v1255_v0 }
  0x1e   :  { %926 = vmatpush3.msra.mxu0 %v1330_v8  ;;  %961 = vmatpush3.msra.mxu1 %v1330_v8 }
  0x1f   :  { %927 = vmatprep.subr.mxu0 %v1255_v0  ;;  %962 = vmatprep.subr.mxu1 %v1255_v0 }
  0x20   :  { %928 = vmatpush3.msra.mxu0 %v1336_v9  ;;  %963 = vmatpush3.msra.mxu1 %v1336_v9 }
  0x21   :  { %929 = vmatprep.subr.mxu0 %v1255_v0  ;;  %964 = vmatprep.subr.mxu1 %v1255_v0 }
  0x22   :  { %930 = vmatpush3.msra.mxu0 %v1342_v10  ;;  %965 = vmatpush3.msra.mxu1 %v1342_v10 }
  0x23   :  { %931 = vmatprep.subr.mxu0 %v1255_v0  ;;  %966 = vmatprep.subr.mxu1 %v1255_v0 }
  0x24   :  { %932 = vmatpush3.msra.mxu0 %v1348_v11  ;;  %967 = vmatpush3.msra.mxu1 %v1348_v11 }
  0x25   :  { %933 = vmatprep.subr.mxu0 %v1255_v0  ;;  %968 = vmatprep.subr.mxu1 %v1255_v0 }
  0x26   :  { %934 = vmatpush3.msra.mxu0 %v1354_v12  ;;  %969 = vmatpush3.msra.mxu1 %v1354_v12 }
  0x27   :  { %935 = vmatprep.subr.mxu0 %v1255_v0  ;;  %970 = vmatprep.subr.mxu1 %v1255_v0 }
  0x28   :  { %936 = vmatpush3.msra.mxu0 %v1360_v13  ;;  %971 = vmatpush3.msra.mxu1 %v1360_v13 }
  0x29   :  { %937 = vmatprep.subr.mxu0 %v1255_v0  ;;  %972 = vmatprep.subr.mxu1 %v1255_v0 }
  0x2a   :  { %938 = vmatpush3.msra.mxu0 %v1366_v14  ;;  %973 = vmatpush3.msra.mxu1 %v1366_v14 }
  0x2b   :  { %939 = vmatprep.subr.mxu0 %v1255_v0  ;;  %974 = vmatprep.subr.mxu1 %v1255_v0 }
  0x2c   :  { %940 = vmatpush3.msra.mxu0 %v1372_v15  ;;  %975 = vmatpush3.msra.mxu1 %v1372_v15 }
  0x2d   :  { %941 = vmatprep.subr.mxu0 %v1255_v0  ;;  %976 = vmatprep.subr.mxu1 %v1255_v0 }
  0x2e   :  { %942 = vmatpush3.msra.mxu0 %v1378_v16  ;;  %977 = vmatpush3.msra.mxu1 %v1378_v16 }
  0x2f   :  { %944 = vmatmul.mubr.f32.vlgmr.msra.gmra.mxu0 %v1385_v17  ;;  %981 = vmatprep.subr.mxu0 %v1255_v0 }
  0x30   :  { %982 = vmatpush3.msra.mxu0 %v1293_v1  ;;  %1013 = vmatprep.mubr.msk.f32.mxu0 %vm1256_vm0, %v1255_v0 }
  0x31   :  { %983 = vmatprep.subr.mxu0 %v1255_v0  ;;  %1016 = vmatprep.subr.mxu1 %v1255_v0 }
  0x32   :  { %984 = vmatpush3.msra.mxu0 %v1295_v2 }
  0x33   :  { %985 = vmatprep.subr.mxu0 %v1255_v0 }
  0x34   :  { %986 = vmatpush3.msra.mxu0 %v1300_v3 }
  0x35   :  { %987 = vmatprep.subr.mxu0 %v1255_v0 }
  0x36   :  { %988 = vmatpush3.msra.mxu0 %v1306_v4 }
  0x37   :  { %989 = vmatprep.subr.mxu0 %v1255_v0 }
  0x38   :  { %990 = vmatpush3.msra.mxu0 %v1312_v5 }
  0x39   :  { %991 = vmatprep.subr.mxu0 %v1255_v0 }
  0x3a   :  { %992 = vmatpush3.msra.mxu0 %v1318_v6 }
  0x3b   :  { %993 = vmatprep.subr.mxu0 %v1255_v0 }
  0x3c   :  { %994 = vmatpush3.msra.mxu0 %v1324_v7 }
  0x3d   :  { %995 = vmatprep.subr.mxu0 %v1255_v0 }
  0x3e   :  { %996 = vmatpush3.msra.mxu0 %v1330_v8 }
  0x3f   :  { %997 = vmatprep.subr.mxu0 %v1255_v0 }
  0x40   :  { %998 = vmatpush3.msra.mxu0 %v1336_v9 }
  0x41   :  { %999 = vmatprep.subr.mxu0 %v1255_v0 }
  0x42   :  { %1000 = vmatpush3.msra.mxu0 %v1342_v10 }
  0x43   :  { %1001 = vmatprep.subr.mxu0 %v1255_v0 }
  0x44   :  { %1002 = vmatpush3.msra.mxu0 %v1348_v11 }
  0x45   :  { %1003 = vmatprep.subr.mxu0 %v1255_v0 }
  0x46   :  { %1004 = vmatpush3.msra.mxu0 %v1354_v12 }
  0x47   :  { %1005 = vmatprep.subr.mxu0 %v1255_v0 }
  0x48   :  { %1006 = vmatpush3.msra.mxu0 %v1360_v13 }
  0x49   :  { %1007 = vmatprep.subr.mxu0 %v1255_v0 }
  0x4a   :  { %1008 = vmatpush3.msra.mxu0 %v1366_v14 }
  0x4b   :  { %1009 = vmatprep.subr.mxu0 %v1255_v0 }
  0x4c   :  { %1010 = vmatpush3.msra.mxu0 %v1372_v15 }
  0x4d   :  { %1011 = vmatprep.subr.mxu0 %v1255_v0 }
  0x4e   :  { %1012 = vmatpush3.msra.mxu0 %v1378_v16 }
  0x4f   :  { %1051 = vmatprep.subr.mxu0 %v1255_v0 }
  0xef   :  { %v116_v19 = vpop.f32.mrf.mxu0 }
  0xf0   :  { %v120_v20 = vadd.f32 %v116_v19, %v33_v18  ;;  %v127_v27 = vadd.f32 %v116_v19, %v1437_v26 }
  0xf1   :  { %v945_v21 = vpop.f32.mrf.mxu0 }
  0xf2   :  { %v121_v22 = vmul.f32 0.5, %v120_v20 }
  0xf4   :  { %1198 = vtanh.f32 %v121_v22 }
 0x101   :  { %v1199_v23 = vpop.eup %1198 }
 0x102   :  { %v123_v24 = vmul.f32 0.5, %v1199_v23 }
 0x104   :  { %v124_v25 = vadd.f32 0.5, %v123_v24 }
 0x106   :  { %125 = vrot.lane.b32.xlu0 %v124_v25, %s1257_s24 }
 0x10a   :  { %131 = vrot.lane.b32.xlu0 %v124_v25, %s1258_s25 }
 0x178   :  { %v126_v28 = vpop.permute.xlu0 %125 }
 0x179   :  { %v128_v29 = vmul.f32 %v127_v27, %v126_v28 }
 0x17b   :  { %v129_v30 = vadd.f32 %v128_v29, %v33_v18 }
 0x17c   :  { %v132_v32 = vpop.permute.xlu0 %131 }
 0x17d   :  { %1200 = vtanh.f32 %v129_v30  ;;  %v135_v33 = vsub.f32 1.0, %v132_v32  ;;  %v137_v35 = vmul.f32 %v132_v32, %v1385_v17  ;;  %v319_v30 = vld [vmem:[%s1662_s0 + $0x3] sm:$0x1] }
 0x18a   :  { %v1201_v31 = vpop.eup %1200 }
 0x18b   :  { %133 = vrot.lane.b32.xlu1 %v1201_v31, %s1257_s24 }
 0x1fd   :  { %v134_v34 = vpop.permute.xlu1 %133 }
 0x1fe   :  { %v136_v36 = vmul.f32 %v135_v33, %v134_v34 }
 0x200   :  { %v138_v37 = vadd.f32 %v137_v35, %v136_v36 }
 0x202   :  { %979 = vmatmul.mubr.f32.vlgmr.msra.gmra.mxu1 %v138_v37 }
 0x203   :  { %1017 = vmatpush3.msra.mxu1 %v1293_v1  ;;  %1048 = vmatprep.mubr.msk.f32.mxu1 %vm1256_vm0, %v1255_v0 }
 0x204   :  { %1018 = vmatprep.subr.mxu1 %v1255_v0 }
 0x205   :  { %1019 = vmatpush3.msra.mxu1 %v1295_v2 }
 0x206   :  { %1020 = vmatprep.subr.mxu1 %v1255_v0 }
 0x207   :  { %1021 = vmatpush3.msra.mxu1 %v1300_v3 }
 0x208   :  { %1022 = vmatprep.subr.mxu1 %v1255_v0 }
 0x209   :  { %1023 = vmatpush3.msra.mxu1 %v1306_v4 }
 0x20a   :  { %1024 = vmatprep.subr.mxu1 %v1255_v0 }
 0x20b   :  { %1025 = vmatpush3.msra.mxu1 %v1312_v5 }
 0x20c   :  { %1026 = vmatprep.subr.mxu1 %v1255_v0 }
 0x20d   :  { %1027 = vmatpush3.msra.mxu1 %v1318_v6 }
 0x20e   :  { %1028 = vmatprep.subr.mxu1 %v1255_v0 }
 0x20f   :  { %1029 = vmatpush3.msra.mxu1 %v1324_v7 }
 0x210   :  { %1030 = vmatprep.subr.mxu1 %v1255_v0 }
 0x211   :  { %1031 = vmatpush3.msra.mxu1 %v1330_v8 }
 0x212   :  { %1032 = vmatprep.subr.mxu1 %v1255_v0 }
 0x213   :  { %1033 = vmatpush3.msra.mxu1 %v1336_v9 }
 0x214   :  { %1034 = vmatprep.subr.mxu1 %v1255_v0 }
 0x215   :  { %1035 = vmatpush3.msra.mxu1 %v1342_v10 }
 0x216   :  { %1036 = vmatprep.subr.mxu1 %v1255_v0 }
 0x217   :  { %1037 = vmatpush3.msra.mxu1 %v1348_v11 }
 0x218   :  { %1038 = vmatprep.subr.mxu1 %v1255_v0 }
 0x219   :  { %1039 = vmatpush3.msra.mxu1 %v1354_v12 }
 0x21a   :  { %1040 = vmatprep.subr.mxu1 %v1255_v0 }
 0x21b   :  { %1041 = vmatpush3.msra.mxu1 %v1360_v13 }
 0x21c   :  { %1042 = vmatprep.subr.mxu1 %v1255_v0 }
 0x21d   :  { %1043 = vmatpush3.msra.mxu1 %v1366_v14 }
 0x21e   :  { %1044 = vmatprep.subr.mxu1 %v1255_v0 }
 0x21f   :  { %1045 = vmatpush3.msra.mxu1 %v1372_v15 }
 0x220   :  { %1046 = vmatprep.subr.mxu1 %v1255_v0 }
 0x221   :  { %1047 = vmatpush3.msra.mxu1 %v1378_v16 }
 0x222   :  { %1086 = vmatprep.subr.mxu1 %v1255_v0 }
 0x2c2   :  { %v206_v39 = vpop.f32.mrf.mxu1 }
 0x2c3   :  { %v210_v40 = vadd.f32 %v206_v39, %v139_v38  ;;  %v217_v46 = vadd.f32 %v206_v39, %v1437_v26 }
 0x2c4   :  { %v980_v41 = vpop.f32.mrf.mxu1 }
 0x2c5   :  { %v211_v42 = vmul.f32 0.5, %v210_v40 }
 0x2c7   :  { %1202 = vtanh.f32 %v211_v42 }
 0x2d4   :  { %v1203_v43 = vpop.eup %1202 }
 0x2d5   :  { %v213_v44 = vmul.f32 0.5, %v1203_v43 }
 0x2d7   :  { %v214_v45 = vadd.f32 0.5, %v213_v44 }
 0x2d9   :  { %221 = vrot.lane.b32.xlu0 %v214_v45, %s1258_s25  ;;  %215 = vrot.lane.b32.xlu1 %v214_v45, %s1257_s24 }
 0x34b   :  { %v216_v47 = vpop.permute.xlu1 %215  ;;  %v222_v51 = vpop.permute.xlu0 %221 }
 0x34c   :  { %v218_v48 = vmul.f32 %v217_v46, %v216_v47  ;;  %v225_v52 = vsub.f32 1.0, %v222_v51  ;;  %v227_v54 = vmul.f32 %v222_v51, %v138_v37 }
 0x34e   :  { %v219_v49 = vadd.f32 %v218_v48, %v139_v38 }
 0x350   :  { %1204 = vtanh.f32 %v219_v49  ;;  %v409_v49 = vld [vmem:[%s1662_s0 + $0x4] sm:$0x1] }
 0x35d   :  { %v1205_v50 = vpop.eup %1204 }
 0x35e   :  { %223 = vrot.lane.b32.xlu1 %v1205_v50, %s1257_s24 }
 0x3d0   :  { %v224_v53 = vpop.permute.xlu1 %223 }
 0x3d1   :  { %v226_v55 = vmul.f32 %v225_v52, %v224_v53 }
 0x3d3   :  { %v228_v56 = vadd.f32 %v227_v54, %v226_v55 }
 0x3d5   :  { %1014 = vmatmul.mubr.f32.vlgmr.msra.gmra.mxu0 %v228_v56 }
 0x3d6   :  { %1052 = vmatpush3.msra.mxu0 %v1293_v1  ;;  %1083 = vmatprep.mubr.msk.f32.mxu0 %vm1256_vm0, %v1255_v0 }
 0x3d7   :  { %1053 = vmatprep.subr.mxu0 %v1255_v0 }
 0x3d8   :  { %1054 = vmatpush3.msra.mxu0 %v1295_v2 }
 0x3d9   :  { %1055 = vmatprep.subr.mxu0 %v1255_v0 }
 0x3da   :  { %1056 = vmatpush3.msra.mxu0 %v1300_v3 }
 0x3db   :  { %1057 = vmatprep.subr.mxu0 %v1255_v0 }
 0x3dc   :  { %1058 = vmatpush3.msra.mxu0 %v1306_v4 }
 0x3dd   :  { %1059 = vmatprep.subr.mxu0 %v1255_v0 }
 0x3de   :  { %1060 = vmatpush3.msra.mxu0 %v1312_v5 }
 0x3df   :  { %1061 = vmatprep.subr.mxu0 %v1255_v0 }
 0x3e0   :  { %1062 = vmatpush3.msra.mxu0 %v1318_v6 }
 0x3e1   :  { %1063 = vmatprep.subr.mxu0 %v1255_v0 }
 0x3e2   :  { %1064 = vmatpush3.msra.mxu0 %v1324_v7 }
 0x3e3   :  { %1065 = vmatprep.subr.mxu0 %v1255_v0 }
 0x3e4   :  { %1066 = vmatpush3.msra.mxu0 %v1330_v8 }
 0x3e5   :  { %1067 = vmatprep.subr.mxu0 %v1255_v0 }
 0x3e6   :  { %1068 = vmatpush3.msra.mxu0 %v1336_v9 }
 0x3e7   :  { %1069 = vmatprep.subr.mxu0 %v1255_v0 }
 0x3e8   :  { %1070 = vmatpush3.msra.mxu0 %v1342_v10 }
 0x3e9   :  { %1071 = vmatprep.subr.mxu0 %v1255_v0 }
 0x3ea   :  { %1072 = vmatpush3.msra.mxu0 %v1348_v11 }
 0x3eb   :  { %1073 = vmatprep.subr.mxu0 %v1255_v0 }
 0x3ec   :  { %1074 = vmatpush3.msra.mxu0 %v1354_v12 }
 0x3ed   :  { %1075 = vmatprep.subr.mxu0 %v1255_v0 }
 0x3ee   :  { %1076 = vmatpush3.msra.mxu0 %v1360_v13 }
 0x3ef   :  { %1077 = vmatprep.subr.mxu0 %v1255_v0 }
 0x3f0   :  { %1078 = vmatpush3.msra.mxu0 %v1366_v14 }
 0x3f1   :  { %1079 = vmatprep.subr.mxu0 %v1255_v0 }
 0x3f2   :  { %1080 = vmatpush3.msra.mxu0 %v1372_v15 }
 0x3f3   :  { %1081 = vmatprep.subr.mxu0 %v1255_v0 }
 0x3f4   :  { %1082 = vmatpush3.msra.mxu0 %v1378_v16 }
 0x3f5   :  { %1121 = vmatprep.subr.mxu0 %v1255_v0 }
 0x495   :  { %v296_v58 = vpop.f32.mrf.mxu0 }
 0x496   :  { %v300_v59 = vadd.f32 %v296_v58, %v229_v57  ;;  %v307_v18 = vadd.f32 %v296_v58, %v1437_v26 }
 0x497   :  { %v1015_v60 = vpop.f32.mrf.mxu0 }
 0x498   :  { %v301_v61 = vmul.f32 0.5, %v300_v59 }
 0x49a   :  { %1206 = vtanh.f32 %v301_v61 }
 0x4a7   :  { %v1207_v62 = vpop.eup %1206 }
 0x4a8   :  { %v303_v63 = vmul.f32 0.5, %v1207_v62 }
 0x4aa   :  { %v304_v17 = vadd.f32 0.5, %v303_v63 }
 0x4ac   :  { %311 = vrot.lane.b32.xlu1 %v304_v17, %s1258_s25  ;;  %305 = vrot.lane.b32.xlu0 %v304_v17, %s1257_s24 }
 0x51e   :  { %v306_v19 = vpop.permute.xlu0 %305  ;;  %v312_v23 = vpop.permute.xlu1 %311 }
 0x51f   :  { %v308_v20 = vmul.f32 %v307_v18, %v306_v19  ;;  %v315_v24 = vsub.f32 1.0, %v312_v23  ;;  %v317_v27 = vmul.f32 %v312_v23, %v228_v56  ;;  %v589_v23 = vld [vmem:[%s1662_s0 + $0x6] sm:$0x1] }
 0x521   :  { %v309_v21 = vadd.f32 %v308_v20, %v229_v57 }
 0x523   :  { %1208 = vtanh.f32 %v309_v21 }
 0x530   :  { %v1209_v22 = vpop.eup %1208 }
 0x531   :  { %313 = vrot.lane.b32.xlu0 %v1209_v22, %s1257_s24 }
 0x5a3   :  { %v314_v25 = vpop.permute.xlu0 %313 }
 0x5a4   :  { %v316_v28 = vmul.f32 %v315_v24, %v314_v25 }
 0x5a6   :  { %v318_v29 = vadd.f32 %v317_v27, %v316_v28 }
 0x5a8   :  { %1049 = vmatmul.mubr.f32.vlgmr.msra.gmra.mxu1 %v318_v29 }
 0x5a9   :  { %1087 = vmatpush3.msra.mxu1 %v1293_v1  ;;  %1118 = vmatprep.mubr.msk.f32.mxu1 %vm1256_vm0, %v1255_v0 }
 0x5aa   :  { %1088 = vmatprep.subr.mxu1 %v1255_v0 }
 0x5ab   :  { %1089 = vmatpush3.msra.mxu1 %v1295_v2 }
 0x5ac   :  { %1090 = vmatprep.subr.mxu1 %v1255_v0 }
 0x5ad   :  { %1091 = vmatpush3.msra.mxu1 %v1300_v3 }
 0x5ae   :  { %1092 = vmatprep.subr.mxu1 %v1255_v0 }
 0x5af   :  { %1093 = vmatpush3.msra.mxu1 %v1306_v4 }
 0x5b0   :  { %1094 = vmatprep.subr.mxu1 %v1255_v0 }
 0x5b1   :  { %1095 = vmatpush3.msra.mxu1 %v1312_v5 }
 0x5b2   :  { %1096 = vmatprep.subr.mxu1 %v1255_v0 }
 0x5b3   :  { %1097 = vmatpush3.msra.mxu1 %v1318_v6 }
 0x5b4   :  { %1098 = vmatprep.subr.mxu1 %v1255_v0 }
 0x5b5   :  { %1099 = vmatpush3.msra.mxu1 %v1324_v7 }
 0x5b6   :  { %1100 = vmatprep.subr.mxu1 %v1255_v0 }
 0x5b7   :  { %1101 = vmatpush3.msra.mxu1 %v1330_v8 }
 0x5b8   :  { %1102 = vmatprep.subr.mxu1 %v1255_v0 }
 0x5b9   :  { %1103 = vmatpush3.msra.mxu1 %v1336_v9 }
 0x5ba   :  { %1104 = vmatprep.subr.mxu1 %v1255_v0 }
 0x5bb   :  { %1105 = vmatpush3.msra.mxu1 %v1342_v10 }
 0x5bc   :  { %1106 = vmatprep.subr.mxu1 %v1255_v0 }
 0x5bd   :  { %1107 = vmatpush3.msra.mxu1 %v1348_v11 }
 0x5be   :  { %1108 = vmatprep.subr.mxu1 %v1255_v0 }
 0x5bf   :  { %1109 = vmatpush3.msra.mxu1 %v1354_v12 }
 0x5c0   :  { %1110 = vmatprep.subr.mxu1 %v1255_v0 }
 0x5c1   :  { %1111 = vmatpush3.msra.mxu1 %v1360_v13 }
 0x5c2   :  { %1112 = vmatprep.subr.mxu1 %v1255_v0 }
 0x5c3   :  { %1113 = vmatpush3.msra.mxu1 %v1366_v14 }
 0x5c4   :  { %1114 = vmatprep.subr.mxu1 %v1255_v0 }
 0x5c5   :  { %1115 = vmatpush3.msra.mxu1 %v1372_v15 }
 0x5c6   :  { %1116 = vmatprep.subr.mxu1 %v1255_v0 }
 0x5c7   :  { %1117 = vmatpush3.msra.mxu1 %v1378_v16 }
 0x5c8   :  { %1156 = vmatprep.subr.mxu1 %v1255_v0 }
 0x668   :  { %v386_v31 = vpop.f32.mrf.mxu1 }
 0x669   :  { %v390_v32 = vadd.f32 %v386_v31, %v319_v30  ;;  %v397_v38 = vadd.f32 %v386_v31, %v1437_v26 }
 0x66a   :  { %v1050_v33 = vpop.f32.mrf.mxu1 }
 0x66b   :  { %v391_v34 = vmul.f32 0.5, %v390_v32 }
 0x66d   :  { %1210 = vtanh.f32 %v391_v34 }
 0x67a   :  { %v1211_v35 = vpop.eup %1210 }
 0x67b   :  { %v393_v36 = vmul.f32 0.5, %v1211_v35 }
 0x67d   :  { %v394_v37 = vadd.f32 0.5, %v393_v36 }
 0x67f   :  { %401 = vrot.lane.b32.xlu0 %v394_v37, %s1258_s25  ;;  %395 = vrot.lane.b32.xlu1 %v394_v37, %s1257_s24 }
 0x6f1   :  { %v396_v39 = vpop.permute.xlu1 %395  ;;  %v402_v43 = vpop.permute.xlu0 %401 }
 0x6f2   :  { %v398_v40 = vmul.f32 %v397_v38, %v396_v39  ;;  %v405_v44 = vsub.f32 1.0, %v402_v43  ;;  %v407_v46 = vmul.f32 %v402_v43, %v318_v29  ;;  %v679_v43 = vld [vmem:[%s1662_s0 + $0x7] sm:$0x1] }
 0x6f4   :  { %v399_v41 = vadd.f32 %v398_v40, %v319_v30 }
 0x6f6   :  { %1212 = vtanh.f32 %v399_v41 }
 0x703   :  { %v1213_v42 = vpop.eup %1212 }
 0x704   :  { %403 = vrot.lane.b32.xlu1 %v1213_v42, %s1257_s24 }
 0x776   :  { %v404_v45 = vpop.permute.xlu1 %403 }
 0x777   :  { %v406_v47 = vmul.f32 %v405_v44, %v404_v45 }
 0x779   :  { %v408_v48 = vadd.f32 %v407_v46, %v406_v47 }
 0x77b   :  { %1084 = vmatmul.mubr.f32.vlgmr.msra.gmra.mxu0 %v408_v48 }
 0x77c   :  { %1122 = vmatpush3.msra.mxu0 %v1293_v1  ;;  %1153 = vmatprep.mubr.msk.f32.mxu0 %vm1256_vm0, %v1255_v0 }
 0x77d   :  { %1123 = vmatprep.subr.mxu0 %v1255_v0 }
 0x77e   :  { %1124 = vmatpush3.msra.mxu0 %v1295_v2 }
 0x77f   :  { %1125 = vmatprep.subr.mxu0 %v1255_v0 }
 0x780   :  { %1126 = vmatpush3.msra.mxu0 %v1300_v3 }
 0x781   :  { %1127 = vmatprep.subr.mxu0 %v1255_v0 }
 0x782   :  { %1128 = vmatpush3.msra.mxu0 %v1306_v4 }
 0x783   :  { %1129 = vmatprep.subr.mxu0 %v1255_v0 }
 0x784   :  { %1130 = vmatpush3.msra.mxu0 %v1312_v5 }
 0x785   :  { %1131 = vmatprep.subr.mxu0 %v1255_v0 }
 0x786   :  { %1132 = vmatpush3.msra.mxu0 %v1318_v6 }
 0x787   :  { %1133 = vmatprep.subr.mxu0 %v1255_v0 }
 0x788   :  { %1134 = vmatpush3.msra.mxu0 %v1324_v7 }
 0x789   :  { %1135 = vmatprep.subr.mxu0 %v1255_v0 }
 0x78a   :  { %1136 = vmatpush3.msra.mxu0 %v1330_v8 }
 0x78b   :  { %1137 = vmatprep.subr.mxu0 %v1255_v0 }
 0x78c   :  { %1138 = vmatpush3.msra.mxu0 %v1336_v9 }
 0x78d   :  { %1139 = vmatprep.subr.mxu0 %v1255_v0 }
 0x78e   :  { %1140 = vmatpush3.msra.mxu0 %v1342_v10 }
 0x78f   :  { %1141 = vmatprep.subr.mxu0 %v1255_v0 }
 0x790   :  { %1142 = vmatpush3.msra.mxu0 %v1348_v11 }
 0x791   :  { %1143 = vmatprep.subr.mxu0 %v1255_v0 }
 0x792   :  { %1144 = vmatpush3.msra.mxu0 %v1354_v12 }
 0x793   :  { %1145 = vmatprep.subr.mxu0 %v1255_v0 }
 0x794   :  { %1146 = vmatpush3.msra.mxu0 %v1360_v13 }
 0x795   :  { %1147 = vmatprep.subr.mxu0 %v1255_v0 }
 0x796   :  { %1148 = vmatpush3.msra.mxu0 %v1366_v14 }
 0x797   :  { %1149 = vmatprep.subr.mxu0 %v1255_v0 }
 0x798   :  { %1150 = vmatpush3.msra.mxu0 %v1372_v15 }
 0x799   :  { %1151 = vmatprep.subr.mxu0 %v1255_v0 }
 0x79a   :  { %1152 = vmatpush3.msra.mxu0 %v1378_v16 }
 0x83b   :  { %v476_v50 = vpop.f32.mrf.mxu0 }
 0x83c   :  { %v480_v51 = vadd.f32 %v476_v50, %v409_v49  ;;  %v487_v57 = vadd.f32 %v476_v50, %v1437_v26 }
 0x83d   :  { %v1085_v52 = vpop.f32.mrf.mxu0 }
 0x83e   :  { %v481_v53 = vmul.f32 0.5, %v480_v51 }
 0x840   :  { %1214 = vtanh.f32 %v481_v53 }
 0x84d   :  { %v1215_v54 = vpop.eup %1214 }
 0x84e   :  { %v483_v55 = vmul.f32 0.5, %v1215_v54 }
 0x850   :  { %v484_v56 = vadd.f32 0.5, %v483_v55 }
 0x852   :  { %491 = vrot.lane.b32.xlu1 %v484_v56, %s1258_s25  ;;  %485 = vrot.lane.b32.xlu0 %v484_v56, %s1257_s24 }
 0x8c4   :  { %v486_v58 = vpop.permute.xlu0 %485  ;;  %v492_v62 = vpop.permute.xlu1 %491 }
 0x8c5   :  { %v488_v59 = vmul.f32 %v487_v57, %v486_v58  ;;  %v495_v63 = vsub.f32 1.0, %v492_v62  ;;  %v497_v18 = vmul.f32 %v492_v62, %v408_v48 }
 0x8c7   :  { %v489_v60 = vadd.f32 %v488_v59, %v409_v49 }
 0x8c9   :  { %1216 = vtanh.f32 %v489_v60 }
 0x8d6   :  { %v1217_v61 = vpop.eup %1216 }
 0x8d7   :  { %493 = vrot.lane.b32.xlu0 %v1217_v61, %s1257_s24 }
 0x949   :  { %v494_v17 = vpop.permute.xlu0 %493 }
 0x94a   :  { %v496_v19 = vmul.f32 %v495_v63, %v494_v17 }
 0x94c   :  { %v498_v20 = vadd.f32 %v497_v18, %v496_v19 }
 0x94e   :  { %1119 = vmatmul.mubr.f32.vlgmr.msra.gmra.mxu1 %v498_v20 }
 0x94f   :  { %1157 = vmatpush3.msra.mxu1 %v1293_v1  ;;  %1188 = vmatprep.mubr.msk.f32.mxu1 %vm1256_vm0, %v1255_v0  ;;  %v499_v1 = vld [vmem:[%s1662_s0 + $0x5] sm:$0x1] }
 0x950   :  { %1158 = vmatprep.subr.mxu1 %v1255_v0 }
 0x951   :  { %1159 = vmatpush3.msra.mxu1 %v1295_v2 }
 0x952   :  { %1160 = vmatprep.subr.mxu1 %v1255_v0 }
 0x953   :  { %1161 = vmatpush3.msra.mxu1 %v1300_v3 }
 0x954   :  { %1162 = vmatprep.subr.mxu1 %v1255_v0 }
 0x955   :  { %1163 = vmatpush3.msra.mxu1 %v1306_v4 }
 0x956   :  { %1164 = vmatprep.subr.mxu1 %v1255_v0 }
 0x957   :  { %1165 = vmatpush3.msra.mxu1 %v1312_v5 }
 0x958   :  { %1166 = vmatprep.subr.mxu1 %v1255_v0 }
 0x959   :  { %1167 = vmatpush3.msra.mxu1 %v1318_v6 }
 0x95a   :  { %1168 = vmatprep.subr.mxu1 %v1255_v0 }
 0x95b   :  { %1169 = vmatpush3.msra.mxu1 %v1324_v7 }
 0x95c   :  { %1170 = vmatprep.subr.mxu1 %v1255_v0 }
 0x95d   :  { %1171 = vmatpush3.msra.mxu1 %v1330_v8 }
 0x95e   :  { %1172 = vmatprep.subr.mxu1 %v1255_v0 }
 0x95f   :  { %1173 = vmatpush3.msra.mxu1 %v1336_v9 }
 0x960   :  { %1174 = vmatprep.subr.mxu1 %v1255_v0 }
 0x961   :  { %1175 = vmatpush3.msra.mxu1 %v1342_v10 }
 0x962   :  { %1176 = vmatprep.subr.mxu1 %v1255_v0 }
 0x963   :  { %1177 = vmatpush3.msra.mxu1 %v1348_v11 }
 0x964   :  { %1178 = vmatprep.subr.mxu1 %v1255_v0 }
 0x965   :  { %1179 = vmatpush3.msra.mxu1 %v1354_v12 }
 0x966   :  { %1180 = vmatprep.subr.mxu1 %v1255_v0 }
 0x967   :  { %1181 = vmatpush3.msra.mxu1 %v1360_v13 }
 0x968   :  { %1182 = vmatprep.subr.mxu1 %v1255_v0 }
 0x969   :  { %1183 = vmatpush3.msra.mxu1 %v1366_v14 }
 0x96a   :  { %1184 = vmatprep.subr.mxu1 %v1255_v0 }
 0x96b   :  { %1185 = vmatpush3.msra.mxu1 %v1372_v15 }
 0x96c   :  { %1186 = vmatprep.subr.mxu1 %v1255_v0 }
 0x96d   :  { %1187 = vmatpush3.msra.mxu1 %v1378_v16 }
 0xa0e   :  { %v566_v2 = vpop.f32.mrf.mxu1 }
 0xa0f   :  { %v570_v3 = vadd.f32 %v566_v2, %v499_v1  ;;  %v577_v0 = vadd.f32 %v566_v2, %v1437_v26 }
 0xa10   :  { %v1120_v4 = vpop.f32.mrf.mxu1 }
 0xa11   :  { %v571_v5 = vmul.f32 0.5, %v570_v3 }
 0xa13   :  { %1218 = vtanh.f32 %v571_v5 }
 0xa20   :  { %v1219_v6 = vpop.eup %1218 }
 0xa21   :  { %v573_v7 = vmul.f32 0.5, %v1219_v6 }
 0xa23   :  { %v574_v8 = vadd.f32 0.5, %v573_v7 }
 0xa25   :  { %581 = vrot.lane.b32.xlu0 %v574_v8, %s1258_s25  ;;  %575 = vrot.lane.b32.xlu1 %v574_v8, %s1257_s24 }
 0xa97   :  { %v576_v9 = vpop.permute.xlu1 %575  ;;  %v582_v13 = vpop.permute.xlu0 %581 }
 0xa98   :  { %v578_v10 = vmul.f32 %v577_v0, %v576_v9  ;;  %v585_v14 = vsub.f32 1.0, %v582_v13  ;;  %v587_v16 = vmul.f32 %v582_v13, %v498_v20 }
 0xa9a   :  { %v579_v11 = vadd.f32 %v578_v10, %v499_v1 }
 0xa9c   :  { %1220 = vtanh.f32 %v579_v11 }
 0xaa9   :  { %v1221_v12 = vpop.eup %1220 }
 0xaaa   :  { %583 = vrot.lane.b32.xlu1 %v1221_v12, %s1257_s24 }
 0xb1c   :  { %v584_v15 = vpop.permute.xlu1 %583 }
 0xb1d   :  { %v586_v21 = vmul.f32 %v585_v14, %v584_v15 }
 0xb1f   :  { %v588_v22 = vadd.f32 %v587_v16, %v586_v21 }
 0xb21   :  { %1154 = vmatmul.mubr.f32.vlgmr.msra.gmra.mxu0 %v588_v22 }
 0xbe1   :  { %v656_v24 = vpop.f32.mrf.mxu0 }
 0xbe2   :  { %v660_v25 = vadd.f32 %v656_v24, %v589_v23  ;;  %v667_v32 = vadd.f32 %v656_v24, %v1437_v26 }
 0xbe3   :  { %v1155_v27 = vpop.f32.mrf.mxu0 }
 0xbe4   :  { %v661_v28 = vmul.f32 0.5, %v660_v25 }
 0xbe6   :  { %1222 = vtanh.f32 %v661_v28 }
 0xbf3   :  { %v1223_v29 = vpop.eup %1222 }
 0xbf4   :  { %v663_v30 = vmul.f32 0.5, %v1223_v29 }
 0xbf6   :  { %v664_v31 = vadd.f32 0.5, %v663_v30 }
 0xbf8   :  { %671 = vrot.lane.b32.xlu1 %v664_v31, %s1258_s25  ;;  %665 = vrot.lane.b32.xlu0 %v664_v31, %s1257_s24 }
 0xc6a   :  { %v666_v33 = vpop.permute.xlu0 %665  ;;  %v672_v37 = vpop.permute.xlu1 %671 }
 0xc6b   :  { %v668_v34 = vmul.f32 %v667_v32, %v666_v33  ;;  %v675_v38 = vsub.f32 1.0, %v672_v37  ;;  %v677_v40 = vmul.f32 %v672_v37, %v588_v22 }
 0xc6d   :  { %v669_v35 = vadd.f32 %v668_v34, %v589_v23 }
 0xc6f   :  { %1224 = vtanh.f32 %v669_v35 }
 0xc7c   :  { %v1225_v36 = vpop.eup %1224 }
 0xc7d   :  { %673 = vrot.lane.b32.xlu0 %v1225_v36, %s1257_s24 }
 0xcef   :  { %v674_v39 = vpop.permute.xlu0 %673 }
 0xcf0   :  { %v676_v41 = vmul.f32 %v675_v38, %v674_v39 }
 0xcf2   :  { %v678_v42 = vadd.f32 %v677_v40, %v676_v41 }
 0xcf4   :  { %1189 = vmatmul.mubr.f32.vlgmr.msra.gmra.mxu1 %v678_v42 }
 0xdb4   :  { %v746_v44 = vpop.f32.mrf.mxu1 }
 0xdb5   :  { %v750_v45 = vadd.f32 %v746_v44, %v679_v43  ;;  %v757_v51 = vadd.f32 %v746_v44, %v1437_v26 }
 0xdb6   :  { %v1190_v46 = vpop.f32.mrf.mxu1 }
 0xdb7   :  { %v751_v47 = vmul.f32 0.5, %v750_v45 }
 0xdb9   :  { %1226 = vtanh.f32 %v751_v47 }
 0xdc6   :  { %v1227_v48 = vpop.eup %1226 }
 0xdc7   :  { %v753_v49 = vmul.f32 0.5, %v1227_v48 }
 0xdc9   :  { %v754_v50 = vadd.f32 0.5, %v753_v49 }
 0xdcb   :  { %761 = vrot.lane.b32.xlu0 %v754_v50, %s1258_s25  ;;  %755 = vrot.lane.b32.xlu1 %v754_v50, %s1257_s24 }
 0xe3d   :  { %v756_v52 = vpop.permute.xlu1 %755  ;;  %v762_v56 = vpop.permute.xlu0 %761 }
 0xe3e   :  { %v758_v53 = vmul.f32 %v757_v51, %v756_v52  ;;  %v765_v57 = vsub.f32 1.0, %v762_v56  ;;  %v767_v59 = vmul.f32 %v762_v56, %v678_v42 }
 0xe40   :  { %v759_v54 = vadd.f32 %v758_v53, %v679_v43 }
 0xe42   :  { %1228 = vtanh.f32 %v759_v54 }
 0xe4f   :  { %v1229_v55 = vpop.eup %1228 }
 0xe50   :  { %763 = vrot.lane.b32.xlu1 %v1229_v55, %s1257_s24 }
 0xec2   :  { %v764_v58 = vpop.permute.xlu1 %763 }
 0xec3   :  { %v766_v60 = vmul.f32 %v765_v57, %v764_v58 }
 0xec5   :  { %v768_v61 = vadd.f32 %v767_v59, %v766_v60 }
 0xec7   :  { %769 = vst [vmem:[%s1666_s4] sm:$0x1] %v768_v61 }
 0xec8   :  { %774 = vsyncpa [#allocation3], 1 }

</bundles_post_ra>
